<compile_context>
chip_gen: v7x
topology: tpu7x:2x2x1
jax: 0.10.0
libtpu: 0.0.40
codegen_flags: <defaults>
</compile_context>

<pallas_src>
import functools

import jax
import jax.numpy as jnp
from jax.experimental import pallas as pl
from jax.experimental.pallas import tpu as pltpu


def _round_up(x, m):
    return (x + m - 1) // m * m


def _fused_conv_in_lrelu_kernel(idx_ref, x_ref, w_ref, g_ref, b_ref,
                                o_ref, pad_ref, *,
                                H, W, KH, KW, C_in_pad, C_out, ph, pw,
                                eps, neg_slope):
    """Fused Conv(kxk, stride 1, same pad) -> InstanceNorm -> LeakyReLU, one image.

    idx_ref : (1,) SMEM                 norm_idx (consumed by gamma/beta index_maps)
    x_ref   : (1, C_in_pad, H*W)        input image, NCHW-flat, channel-padded, f32
    w_ref   : (KH, C_out, KW*C_in_pad)  conv weight, one matmul matrix per dy (compute dtype)
    g_ref   : (1, C_out, 1)             gamma of the SELECTED norm (f32)
    b_ref   : (1, C_out, 1)             beta  of the SELECTED norm (f32)
    o_ref   : (1, C_out, H*W)           output, NCHW-flat (lane-dense stores)
    pad_ref : (C_in_pad, Lbuf)          VMEM scratch: flat zero-padded image (compute dtype)
    """
    del idx_ref
    L = H * W
    cdtype = pad_ref.dtype
    front = ph * W + pw                    # flat offset of pixel (0, 0) inside pad_ref
    lbuf = pad_ref.shape[1]

    # Halo-only zeroing (the data region [front, front+L) is fully overwritten right after).
    # Do NOT gate this on program_id: under 'parallel' batch sharding each core has its own
    # scratch and core 1's first step is not program 0.
    if front > 0:
        pad_ref[:, 0:front] = jnp.zeros((C_in_pad, front), cdtype)
    tail = lbuf - front - L
    if tail > 0:
        pad_ref[:, front + L:lbuf] = jnp.zeros((C_in_pad, tail), cdtype)
    # Single f32 -> compute-dtype cast while copying the image into the pad scratch.
    pad_ref[:, pl.ds(front, L)] = x_ref[0].astype(cdtype)

    # Column index of every flat position (for W wrap-around masks), generated in-kernel
    # (no mask input / DMA).  Only needed when KW > 1.
    cols = None
    if KW > 1:
        cols = jax.lax.broadcasted_iota(jnp.int32, (1, L), 1) % W

    # Per-dy im2col slab + matmul accumulation: tap (dy, dx) of the padded image is a pure
    # lane shift by dy*W + dx of the flat buffer.  Stacking the KW taps of one dy along the
    # tile-aligned channel axis keeps the contraction depth at KW*C_in per dot while avoiding
    # materializing the full KH*KW im2col.
    acc = None
    for dy in range(KH):
        pieces = []
        for dx in range(KW):
            patch = pad_ref[:, pl.ds(dy * W + dx, L)]          # (C_in_pad, L), compute dtype
            if dx < pw:                                        # left-edge wrap-around
                patch = jnp.where(cols >= (pw - dx), patch, jnp.zeros_like(patch))
            elif dx > pw:                                      # right-edge wrap-around
                patch = jnp.where(cols < (W - (dx - pw)), patch, jnp.zeros_like(patch))
            pieces.append(patch)
        slab = pieces[0] if KW == 1 else jnp.concatenate(pieces, axis=0)  # (KW*C_in_pad, L)
        part = jnp.dot(w_ref[dy], slab, preferred_element_type=jnp.float32)  # (C_out, L) f32
        acc = part if acc is None else acc + part

    # InstanceNorm2d (biased variance, two-pass for f32 safety) + affine of the selected norm
    # folded into a single FMA, then LeakyReLU.  Kept in f32 on the VPU/EUP (v5e-safe).
    mean = jnp.mean(acc, axis=1, keepdims=True)                 # (C_out, 1)
    d = acc - mean
    var = jnp.mean(d * d, axis=1, keepdims=True)                # (C_out, 1)
    scale = g_ref[0] * jax.lax.rsqrt(var + eps)                 # gamma * rsqrt(var+eps)
    y = d * scale + b_ref[0]
    y = jnp.where(y >= 0, y, neg_slope * y)
    o_ref[0] = y.astype(o_ref.dtype)                            # lane-dense store


def conv_dropout_norm_relu_separate_norm(x_nchw, weight, gammas, betas, norm_idx,
                                         *, stride=(1, 1), eps=1e-5, neg_slope=0.01,
                                         compute_dtype=jnp.bfloat16, out_dtype=None):
    """Forward pass of ConvDropoutNormReLUSeparateNorm.

    x_nchw : (N, C_in, H, W) f32
    weight : (C_out, C_in, KH, KW)  (OIHW, like nn.Conv2d.weight; conv_bias=False)
    gammas / betas : (num_separate_norms, C_out)
    norm_idx : int (or int32 scalar) selecting which InstanceNorm's affine params to use
    out_dtype : output dtype (default: x dtype; pass bf16 if the consumer accepts it to
                halve the output writeback traffic)
    """
    N, C_in, H, W = x_nchw.shape
    C_out, _, KH, KW = weight.shape
    if tuple(stride) != (1, 1):
        # TODO(synk): stride>1 needs a space-to-depth (per-phase) kernel so the MXU only
        # computes the strided outputs and InstanceNorm stats run on the strided map.
        raise NotImplementedError("Pallas kernel currently implements stride=(1,1) only.")
    if KH % 2 == 0 or KW % 2 == 0:
        raise NotImplementedError("odd kernel sizes only (padding=(k-1)//2 'same' conv).")
    ph, pw = (KH - 1) // 2, (KW - 1) // 2
    L = H * W
    out_dtype = x_nchw.dtype if out_dtype is None else out_dtype

    # Sublane-pack channel padding: makes every per-dx concat offset tile-aligned so the
    # im2col build is plain tile copies.  No-op for realistic C_in (already a multiple).
    pack = 16 if jnp.dtype(compute_dtype).itemsize == 2 else 8
    C_in_pad = _round_up(C_in, pack)

    # Flat padded-buffer length: ph top rows + image + ph bottom rows + (KW-1) shift slack,
    # rounded up to a full lane tile.
    lbuf = _round_up((H + 2 * ph) * W + (KW - 1), 128)

    # Weight as (KH, C_out, KW*C_in_pad); column index = dx*C_in_pad + ci, matching the
    # kernel's per-dy concat order.  Cast once to the MXU compute dtype (tiny tensor).
    w = jnp.asarray(weight, jnp.float32)
    if C_in_pad != C_in:
        w = jnp.pad(w, ((0, 0), (0, C_in_pad - C_in), (0, 0), (0, 0)))
    w_mat = jnp.transpose(w, (2, 0, 3, 1)).reshape(KH, C_out, KW * C_in_pad)
    w_mat = w_mat.astype(compute_dtype)

    gam = jnp.asarray(gammas, jnp.float32).reshape(-1, C_out, 1)
    bet = jnp.asarray(betas, jnp.float32).reshape(-1, C_out, 1)

    x_flat = x_nchw.reshape(N, C_in, L)                 # free reshape (no transpose, no copy)
    if C_in_pad != C_in:                                # zero channels; no-op at realistic C_in
        x_flat = jnp.pad(x_flat, ((0, 0), (0, C_in_pad - C_in), (0, 0)))
    norm_idx_arr = jnp.asarray(norm_idx, dtype=jnp.int32).reshape(1)

    kernel = functools.partial(
        _fused_conv_in_lrelu_kernel,
        H=H, W=W, KH=KH, KW=KW, C_in_pad=C_in_pad, C_out=C_out, ph=ph, pw=pw,
        eps=eps, neg_slope=neg_slope)

    # Per-step VMEM working set (double-buffered I/O blocks + scratch + temporaries): size the
    # scoped-VMEM limit from it instead of a fixed cap.
    cd_item = jnp.dtype(compute_dtype).itemsize
    x_item = jnp.dtype(x_flat.dtype).itemsize
    o_item = jnp.dtype(out_dtype).itemsize
    work_bytes = (
        2 * C_in_pad * L * x_item                     # x block (double-buffered)
        + 2 * KH * C_out * KW * C_in_pad * cd_item    # weight block
        + 2 * C_out * L * o_item                      # output block (double-buffered)
        + C_in_pad * lbuf * cd_item                   # pad scratch
        + 2 * KW * C_in_pad * L * cd_item             # per-dy im2col slab (+ slack)
        + 4 * C_out * L * 4                           # f32 accumulator / norm temporaries
    )
    vmem_limit = int(min(max(work_bytes + (4 << 20), 16 << 20), 96 << 20))

    cost = pl.CostEstimate(
        flops=2 * N * C_out * KH * KW * C_in * L,
        transcendentals=N * C_out,
        bytes_accessed=(N * C_in_pad * L * x_item + N * C_out * L * o_item
                        + KH * C_out * KW * C_in_pad * cd_item + 2 * C_out * 4))

    # TODO(synk): for N==1 / very large images on v7x (64 MiB VMEM, 2 TCs), add an H-tile grid
    # axis with a (KH-1)-row halo and a two-pass streaming InstanceNorm (sum/sumsq scratch +
    # normalize sweep); the per-dy bf16 slabs already bound the per-step working set to
    # roughly (KW*C_in)*L*2 + C_out*L*(4+2*o) bytes, which fits typical nnU-Net layers.
    # TODO(synk): for tiny C_out (< ~32) on v5e, batch-tile >=2 images per grid step so each
    # matmul covers more result columns per weight staging.
    out_flat = pl.pallas_call(
        kernel,
        out_shape=jax.ShapeDtypeStruct((N, C_out, L), out_dtype),
        grid_spec=pltpu.PrefetchScalarGridSpec(
            num_scalar_prefetch=1,            # norm_idx -> SMEM, drives gamma/beta index_maps
            grid=(N,),
            in_specs=[
                pl.BlockSpec((1, C_in_pad, L), lambda n, nidx: (n, 0, 0)),
                pl.BlockSpec((KH, C_out, KW * C_in_pad), lambda n, nidx: (0, 0, 0)),
                pl.BlockSpec((1, C_out, 1), lambda n, nidx: (nidx[0], 0, 0)),
                pl.BlockSpec((1, C_out, 1), lambda n, nidx: (nidx[0], 0, 0)),
            ],
            out_specs=pl.BlockSpec((1, C_out, L), lambda n, nidx: (n, 0, 0)),
            scratch_shapes=[pltpu.VMEM((C_in_pad, lbuf), compute_dtype)],
        ),
        compiler_params=pltpu.CompilerParams(
            dimension_semantics=("parallel",),        # batch across megacore TCs
            vmem_limit_bytes=vmem_limit,
        ),
        cost_estimate=cost,
    )(norm_idx_arr, x_flat, w_mat, gam, bet)

    return out_flat.reshape(N, C_out, H, W)            # free reshape back to NCHW


# ------------------------ pure-JAX reference (for validation) ------------------------
def _ref_forward(x_nchw, weight, gammas, betas, norm_idx, *, stride=(1, 1),
                 eps=1e-5, neg_slope=0.01):
    KH, KW = weight.shape[2], weight.shape[3]
    ph, pw = (KH - 1) // 2, (KW - 1) // 2
    y = jax.lax.conv_general_dilated(
        x_nchw, weight, window_strides=stride, padding=[(ph, ph), (pw, pw)],
        dimension_numbers=("NCHW", "OIHW", "NCHW"))
    mean = jnp.mean(y, axis=(2, 3), keepdims=True)
    var = jnp.mean(jnp.square(y - mean), axis=(2, 3), keepdims=True)
    y = (y - mean) * jax.lax.rsqrt(var + eps)
    g = gammas[norm_idx].reshape(1, -1, 1, 1)
    b = betas[norm_idx].reshape(1, -1, 1, 1)
    y = y * g + b
    return jnp.where(y >= 0, y, neg_slope * y)


if __name__ == "__main__":
    key = jax.random.PRNGKey(0)
    N, C_in, H, W = 2, 4, 16, 16
    C_out, KH, KW = 8, 3, 3
    num_separate_norms = 2

    kx, kw, kg, kb = jax.random.split(key, 4)
    x = jax.random.normal(kx, (N, C_in, H, W), jnp.float32)                       # NCHW like PyTorch
    weight = 0.1 * jax.random.normal(kw, (C_out, C_in, KH, KW), jnp.float32)      # OIHW, bias=False
    gammas = 1.0 + 0.1 * jax.random.normal(kg, (num_separate_norms, C_out), jnp.float32)
    betas = 0.1 * jax.random.normal(kb, (num_separate_norms, C_out), jnp.float32)

    # bf16-MXU path (default): check both separate norms against the f32 reference.
    for ni in range(num_separate_norms):
        out = conv_dropout_norm_relu_separate_norm(x, weight, gammas, betas, ni)
        out = jax.block_until_ready(out)
        ref = _ref_forward(x, weight, gammas, betas, ni)
        assert out.shape == (N, C_out, H, W), out.shape
        err = float(jnp.max(jnp.abs(out - ref)))
        assert err < 6e-2, f"bf16 path mismatch (norm_idx={ni}): max abs err {err}"

    # f32 compute path: tighter check of the kernel's conv/norm/relu math itself.
    out32 = conv_dropout_norm_relu_separate_norm(x, weight, gammas, betas, 1,
                                                 compute_dtype=jnp.float32)
    out32 = jax.block_until_ready(out32)
    ref32 = _ref_forward(x, weight, gammas, betas, 1)
    err32 = float(jnp.max(jnp.abs(out32 - ref32)))
    assert err32 < 2e-2, f"f32 path mismatch: max abs err {err32}"

    print("KERNEL_OK")
</pallas_src>

<mosaic_0001>
module attributes {stable_mosaic.version = 11 : i64} {
  func.func @_fused_conv_in_lrelu_kernel(%arg0: i32, %arg1: memref<1xi32, #tpu.memory_space<smem>>, %arg2: memref<1x16x256xf32, #tpu.memory_space<vmem>>, %arg3: memref<3x8x48xbf16, #tpu.memory_space<vmem>>, %arg4: memref<1x8x1xf32, #tpu.memory_space<vmem>>, %arg5: memref<1x8x1xf32, #tpu.memory_space<vmem>>, %arg6: memref<1x8x256xf32, #tpu.memory_space<vmem>>, %arg7: memref<16x384xbf16, #tpu.memory_space<vmem>>) attributes {dimension_semantics = [#tpu.dimension_semantics<parallel>], iteration_bounds = array<i64: 2>, scalar_prefetch = 1 : i64, scratch_operands = 1 : i64, tpu.core_type = #tpu.core_type<tc>, window_params = [{transform_indices = @transform_0, window_bounds = array<i64: 1, 16, 256>}, {pipeline_mode = #tpu.pipeline_mode<synchronous>, transform_indices = @transform_1, window_bounds = array<i64: 3, 8, 48>}, {transform_indices = @transform_2, window_bounds = array<i64: 1, 8, 1>}, {transform_indices = @transform_3, window_bounds = array<i64: 1, 8, 1>}, {transform_indices = @transform_4, window_bounds = array<i64: 1, 8, 256>}]} {
    %cst = arith.constant 0.000000e+00 : bf16
    %0 = vector.broadcast %cst : bf16 to vector<16x17xbf16>
    %c0 = arith.constant 0 : index
    %c0_0 = arith.constant 0 : index
    %1 = vector.load %arg7[%c0, %c0_0] : memref<16x384xbf16, #tpu.memory_space<vmem>>, vector<16x17xbf16>
    tpu.vector_store %arg7[%c0, %c0_0], %0 {strides = array<i32>} : memref<16x384xbf16, #tpu.memory_space<vmem>>, vector<16x17xbf16>,
    %cst_1 = arith.constant 0.000000e+00 : bf16
    %2 = vector.broadcast %cst_1 : bf16 to vector<16x111xbf16>
    %c0_2 = arith.constant 0 : index
    %c273 = arith.constant 273 : index
    %3 = vector.load %arg7[%c0_2, %c273] : memref<16x384xbf16, #tpu.memory_space<vmem>>, vector<16x111xbf16>
    tpu.vector_store %arg7[%c0_2, %c273], %2 {strides = array<i32>} : memref<16x384xbf16, #tpu.memory_space<vmem>>, vector<16x111xbf16>,
    %c0_3 = arith.constant 0 : index
    %c0_4 = arith.constant 0 : index
    %c0_5 = arith.constant 0 : index
    %4 = vector.load %arg2[%c0_3, %c0_4, %c0_5] : memref<1x16x256xf32, #tpu.memory_space<vmem>>, vector<1x16x256xf32>
    %5 = vector.shape_cast %4 : vector<1x16x256xf32> to vector<16x256xf32>
    %6 = arith.truncf %5 : vector<16x256xf32> to vector<16x256xbf16>
    %c0_6 = arith.constant 0 : index
    %c17 = arith.constant 17 : index
    %7 = vector.load %arg7[%c0_6, %c17] : memref<16x384xbf16, #tpu.memory_space<vmem>>, vector<16x256xbf16>
    tpu.vector_store %arg7[%c0_6, %c17], %6 {strides = array<i32>} : memref<16x384xbf16, #tpu.memory_space<vmem>>, vector<16x256xbf16>,
    %8 = tpu.iota {dimensions = array<i32: 1>} : vector<1x256xi32>
    %c16_i32 = arith.constant 16 : i32
    %c0_i32 = arith.constant 0 : i32
    %9 = arith.cmpi eq, %c16_i32, %c0_i32 : i32
    %c1_i32 = arith.constant 1 : i32
    %10 = arith.select %9, %c1_i32, %c16_i32 : i32
    %11 = vector.broadcast %10 : i32 to vector<1x256xi32>
    %12 = arith.remsi %8, %11 : vector<1x256xi32>
    %c0_i32_7 = arith.constant 0 : i32
    %13 = vector.broadcast %c0_i32_7 : i32 to vector<1x256xi32>
    %14 = arith.cmpi ne, %12, %13 : vector<1x256xi32>
    %c0_i32_8 = arith.constant 0 : i32
    %15 = vector.broadcast %c0_i32_8 : i32 to vector<1x256xi32>
    %16 = arith.cmpi slt, %12, %15 : vector<1x256xi32>
    %c0_i32_9 = arith.constant 0 : i32
    %17 = arith.cmpi slt, %10, %c0_i32_9 : i32
    %18 = vector.broadcast %17 : i1 to vector<1x256xi1>
    %19 = vector.broadcast %18 : vector<1x256xi1> to vector<1x256xi1>
    %20 = arith.xori %16, %19 : vector<1x256xi1>
    %21 = arith.andi %20, %14 : vector<1x256xi1>
    %22 = vector.broadcast %10 : i32 to vector<1x256xi32>
    %23 = arith.addi %12, %22 : vector<1x256xi32>
    %24 = arith.select %21, %23, %12 : vector<1x256xi1>, vector<1x256xi32>
    %c0_10 = arith.constant 0 : index
    %c0_11 = arith.constant 0 : index
    %25 = vector.load %arg7[%c0_10, %c0_11] : memref<16x384xbf16, #tpu.memory_space<vmem>>, vector<16x256xbf16>
    %c1_i32_12 = arith.constant 1 : i32
    %26 = vector.broadcast %c1_i32_12 : i32 to vector<1x256xi32>
    %27 = arith.cmpi sge, %24, %26 : vector<1x256xi32>
    %cst_13 = arith.constant 0.000000e+00 : bf16
    %28 = vector.broadcast %cst_13 : bf16 to vector<16x256xbf16>
    %29 = vector.shape_cast %27 : vector<1x256xi1> to vector<1x256xi1>
    %30 = vector.broadcast %29 : vector<1x256xi1> to vector<16x256xi1>
    %31 = arith.select %30, %25, %28 : vector<16x256xi1>, vector<16x256xbf16>
    %c0_14 = arith.constant 0 : index
    %c1 = arith.constant 1 : index
    %32 = vector.load %arg7[%c0_14, %c1] : memref<16x384xbf16, #tpu.memory_space<vmem>>, vector<16x256xbf16>
    %c0_15 = arith.constant 0 : index
    %c2 = arith.constant 2 : index
    %33 = vector.load %arg7[%c0_15, %c2] : memref<16x384xbf16, #tpu.memory_space<vmem>>, vector<16x256xbf16>
    %c15_i32 = arith.constant 15 : i32
    %34 = vector.broadcast %c15_i32 : i32 to vector<1x256xi32>
    %35 = arith.cmpi slt, %24, %34 : vector<1x256xi32>
    %cst_16 = arith.constant 0.000000e+00 : bf16
    %36 = vector.broadcast %cst_16 : bf16 to vector<16x256xbf16>
    %37 = vector.shape_cast %35 : vector<1x256xi1> to vector<1x256xi1>
    %38 = vector.broadcast %37 : vector<1x256xi1> to vector<16x256xi1>
    %39 = arith.select %38, %33, %36 : vector<16x256xi1>, vector<16x256xbf16>
    %40 = tpu.concatenate %31, %32, %39 in 0 : vector<16x256xbf16>, vector<16x256xbf16>, vector<16x256xbf16> -> vector<48x256xbf16>
    %c0_17 = arith.constant 0 : index
    %c0_18 = arith.constant 0 : index
    %c0_19 = arith.constant 0 : index
    %41 = vector.load %arg3[%c0_17, %c0_18, %c0_19] : memref<3x8x48xbf16, #tpu.memory_space<vmem>>, vector<1x8x48xbf16>
    %42 = vector.shape_cast %41 : vector<1x8x48xbf16> to vector<8x48xbf16>
    %cst_20 = arith.constant dense<0.000000e+00> : vector<8x256xf32>
    %43 = tpu.matmul %42, %40, %cst_20 {dimension_numbers = #tpu.dot_dimension_numbers<[1], [0], [0], [1], [0, 0, 1, 1], [], []>} : vector<8x48xbf16>, vector<48x256xbf16>, vector<8x256xf32> -> vector<8x256xf32>
    %c0_21 = arith.constant 0 : index
    %c16 = arith.constant 16 : index
    %44 = vector.load %arg7[%c0_21, %c16] : memref<16x384xbf16, #tpu.memory_space<vmem>>, vector<16x256xbf16>
    %c1_i32_22 = arith.constant 1 : i32
    %45 = vector.broadcast %c1_i32_22 : i32 to vector<1x256xi32>
    %46 = arith.cmpi sge, %24, %45 : vector<1x256xi32>
    %cst_23 = arith.constant 0.000000e+00 : bf16
    %47 = vector.broadcast %cst_23 : bf16 to vector<16x256xbf16>
    %48 = vector.shape_cast %46 : vector<1x256xi1> to vector<1x256xi1>
    %49 = vector.broadcast %48 : vector<1x256xi1> to vector<16x256xi1>
    %50 = arith.select %49, %44, %47 : vector<16x256xi1>, vector<16x256xbf16>
    %c0_24 = arith.constant 0 : index
    %c17_25 = arith.constant 17 : index
    %51 = vector.load %arg7[%c0_24, %c17_25] : memref<16x384xbf16, #tpu.memory_space<vmem>>, vector<16x256xbf16>
    %c0_26 = arith.constant 0 : index
    %c18 = arith.constant 18 : index
    %52 = vector.load %arg7[%c0_26, %c18] : memref<16x384xbf16, #tpu.memory_space<vmem>>, vector<16x256xbf16>
    %c15_i32_27 = arith.constant 15 : i32
    %53 = vector.broadcast %c15_i32_27 : i32 to vector<1x256xi32>
    %54 = arith.cmpi slt, %24, %53 : vector<1x256xi32>
    %cst_28 = arith.constant 0.000000e+00 : bf16
    %55 = vector.broadcast %cst_28 : bf16 to vector<16x256xbf16>
    %56 = vector.shape_cast %54 : vector<1x256xi1> to vector<1x256xi1>
    %57 = vector.broadcast %56 : vector<1x256xi1> to vector<16x256xi1>
    %58 = arith.select %57, %52, %55 : vector<16x256xi1>, vector<16x256xbf16>
    %59 = tpu.concatenate %50, %51, %58 in 0 : vector<16x256xbf16>, vector<16x256xbf16>, vector<16x256xbf16> -> vector<48x256xbf16>
    %c1_29 = arith.constant 1 : index
    %c0_30 = arith.constant 0 : index
    %c0_31 = arith.constant 0 : index
    %60 = vector.load %arg3[%c1_29, %c0_30, %c0_31] : memref<3x8x48xbf16, #tpu.memory_space<vmem>>, vector<1x8x48xbf16>
    %61 = vector.shape_cast %60 : vector<1x8x48xbf16> to vector<8x48xbf16>
    %cst_32 = arith.constant dense<0.000000e+00> : vector<8x256xf32>
    %62 = tpu.matmul %61, %59, %cst_32 {dimension_numbers = #tpu.dot_dimension_numbers<[1], [0], [0], [1], [0, 0, 1, 1], [], []>} : vector<8x48xbf16>, vector<48x256xbf16>, vector<8x256xf32> -> vector<8x256xf32>
    %63 = arith.addf %43, %62 : vector<8x256xf32>
    %c0_33 = arith.constant 0 : index
    %c32 = arith.constant 32 : index
    %64 = vector.load %arg7[%c0_33, %c32] : memref<16x384xbf16, #tpu.memory_space<vmem>>, vector<16x256xbf16>
    %c1_i32_34 = arith.constant 1 : i32
    %65 = vector.broadcast %c1_i32_34 : i32 to vector<1x256xi32>
    %66 = arith.cmpi sge, %24, %65 : vector<1x256xi32>
    %cst_35 = arith.constant 0.000000e+00 : bf16
    %67 = vector.broadcast %cst_35 : bf16 to vector<16x256xbf16>
    %68 = vector.shape_cast %66 : vector<1x256xi1> to vector<1x256xi1>
    %69 = vector.broadcast %68 : vector<1x256xi1> to vector<16x256xi1>
    %70 = arith.select %69, %64, %67 : vector<16x256xi1>, vector<16x256xbf16>
    %c0_36 = arith.constant 0 : index
    %c33 = arith.constant 33 : index
    %71 = vector.load %arg7[%c0_36, %c33] : memref<16x384xbf16, #tpu.memory_space<vmem>>, vector<16x256xbf16>
    %c0_37 = arith.constant 0 : index
    %c34 = arith.constant 34 : index
    %72 = vector.load %arg7[%c0_37, %c34] : memref<16x384xbf16, #tpu.memory_space<vmem>>, vector<16x256xbf16>
    %c15_i32_38 = arith.constant 15 : i32
    %73 = vector.broadcast %c15_i32_38 : i32 to vector<1x256xi32>
    %74 = arith.cmpi slt, %24, %73 : vector<1x256xi32>
    %cst_39 = arith.constant 0.000000e+00 : bf16
    %75 = vector.broadcast %cst_39 : bf16 to vector<16x256xbf16>
    %76 = vector.shape_cast %74 : vector<1x256xi1> to vector<1x256xi1>
    %77 = vector.broadcast %76 : vector<1x256xi1> to vector<16x256xi1>
    %78 = arith.select %77, %72, %75 : vector<16x256xi1>, vector<16x256xbf16>
    %79 = tpu.concatenate %70, %71, %78 in 0 : vector<16x256xbf16>, vector<16x256xbf16>, vector<16x256xbf16> -> vector<48x256xbf16>
    %c2_40 = arith.constant 2 : index
    %c0_41 = arith.constant 0 : index
    %c0_42 = arith.constant 0 : index
    %80 = vector.load %arg3[%c2_40, %c0_41, %c0_42] : memref<3x8x48xbf16, #tpu.memory_space<vmem>>, vector<1x8x48xbf16>
    %81 = vector.shape_cast %80 : vector<1x8x48xbf16> to vector<8x48xbf16>
    %cst_43 = arith.constant dense<0.000000e+00> : vector<8x256xf32>
    %82 = tpu.matmul %81, %79, %cst_43 {dimension_numbers = #tpu.dot_dimension_numbers<[1], [0], [0], [1], [0, 0, 1, 1], [], []>} : vector<8x48xbf16>, vector<48x256xbf16>, vector<8x256xf32> -> vector<8x256xf32>
    %83 = arith.addf %63, %82 : vector<8x256xf32>
    %cst_44 = arith.constant dense<0.000000e+00> : vector<8xf32>
    %84 = vector.multi_reduction <add>, %83, %cst_44 [1] : vector<8x256xf32> to vector<8xf32>
    %85 = vector.shape_cast %84 : vector<8xf32> to vector<8x1xf32>
    %cst_45 = arith.constant 2.560000e+02 : f32
    %86 = vector.broadcast %cst_45 : f32 to vector<8x1xf32>
    %87 = arith.divf %85, %86 : vector<8x1xf32>
    %88 = vector.broadcast %87 : vector<8x1xf32> to vector<8x256xf32>
    %89 = arith.subf %83, %88 : vector<8x256xf32>
    %90 = arith.mulf %89, %89 : vector<8x256xf32>
    %cst_46 = arith.constant dense<0.000000e+00> : vector<8xf32>
    %91 = vector.multi_reduction <add>, %90, %cst_46 [1] : vector<8x256xf32> to vector<8xf32>
    %92 = vector.shape_cast %91 : vector<8xf32> to vector<8x1xf32>
    %cst_47 = arith.constant 2.560000e+02 : f32
    %93 = vector.broadcast %cst_47 : f32 to vector<8x1xf32>
    %94 = arith.divf %92, %93 : vector<8x1xf32>
    %c0_48 = arith.constant 0 : index
    %c0_49 = arith.constant 0 : index
    %c0_50 = arith.constant 0 : index
    %95 = vector.load %arg4[%c0_48, %c0_49, %c0_50] : memref<1x8x1xf32, #tpu.memory_space<vmem>>, vector<1x8x1xf32>
    %96 = vector.shape_cast %95 : vector<1x8x1xf32> to vector<8x1xf32>
    %cst_51 = arith.constant 9.99999974E-6 : f32
    %97 = vector.broadcast %cst_51 : f32 to vector<8x1xf32>
    %98 = arith.addf %94, %97 : vector<8x1xf32>
    %99 = math.rsqrt %98 : vector<8x1xf32>
    %100 = arith.mulf %96, %99 : vector<8x1xf32>
    %101 = vector.broadcast %100 : vector<8x1xf32> to vector<8x256xf32>
    %102 = arith.mulf %89, %101 : vector<8x256xf32>
    %c0_52 = arith.constant 0 : index
    %c0_53 = arith.constant 0 : index
    %c0_54 = arith.constant 0 : index
    %103 = vector.load %arg5[%c0_52, %c0_53, %c0_54] : memref<1x8x1xf32, #tpu.memory_space<vmem>>, vector<1x8x1xf32>
    %104 = vector.shape_cast %103 : vector<1x8x1xf32> to vector<8x1xf32>
    %105 = vector.broadcast %104 : vector<8x1xf32> to vector<8x256xf32>
    %106 = arith.addf %102, %105 : vector<8x256xf32>
    %cst_55 = arith.constant 0.000000e+00 : f32
    %107 = vector.broadcast %cst_55 : f32 to vector<8x256xf32>
    %108 = arith.cmpf oge, %106, %107 : vector<8x256xf32>
    %cst_56 = arith.constant 0.00999999977 : f32
    %109 = vector.broadcast %cst_56 : f32 to vector<8x256xf32>
    %110 = arith.mulf %109, %106 : vector<8x256xf32>
    %111 = arith.select %108, %106, %110 : vector<8x256xi1>, vector<8x256xf32>
    %c0_57 = arith.constant 0 : index
    %c0_58 = arith.constant 0 : index
    %c0_59 = arith.constant 0 : index
    %112 = vector.load %arg6[%c0_57, %c0_58, %c0_59] : memref<1x8x256xf32, #tpu.memory_space<vmem>>, vector<1x8x256xf32>
    %113 = vector.shape_cast %112 : vector<1x8x256xf32> to vector<8x256xf32>
    %114 = vector.shape_cast %111 : vector<8x256xf32> to vector<1x8x256xf32>
    tpu.vector_store %arg6[%c0_57, %c0_58, %c0_59], %114 {strides = array<i32>} : memref<1x8x256xf32, #tpu.memory_space<vmem>>, vector<1x8x256xf32>,
    return
  }
  func.func @transform_0(%arg0: i32, %arg1: memref<1xi32, #tpu.memory_space<smem>>) -> (i32, i32, i32) {
    %c0_i32 = arith.constant 0 : i32
    %c0_i32_0 = arith.constant 0 : i32
    %c0_i32_1 = arith.constant 0 : i32
    return %arg0, %c0_i32, %c0_i32_0 : i32, i32, i32
  }
  func.func @transform_1(%arg0: i32, %arg1: memref<1xi32, #tpu.memory_space<smem>>) -> (i32, i32, i32) {
    %c0_i32 = arith.constant 0 : i32
    %c0_i32_0 = arith.constant 0 : i32
    %c0_i32_1 = arith.constant 0 : i32
    %c0_i32_2 = arith.constant 0 : i32
    return %c0_i32, %c0_i32_0, %c0_i32_1 : i32, i32, i32
  }
  func.func @transform_2(%arg0: i32, %arg1: memref<1xi32, #tpu.memory_space<smem>>) -> (i32, i32, i32) {
    %c0 = arith.constant 0 : index
    %0 = memref.load %arg1[%c0] : memref<1xi32, #tpu.memory_space<smem>>
    %c0_i32 = arith.constant 0 : i32
    %c0_i32_0 = arith.constant 0 : i32
    %c0_i32_1 = arith.constant 0 : i32
    return %0, %c0_i32, %c0_i32_0 : i32, i32, i32
  }
  func.func @transform_3(%arg0: i32, %arg1: memref<1xi32, #tpu.memory_space<smem>>) -> (i32, i32, i32) {
    %c0 = arith.constant 0 : index
    %0 = memref.load %arg1[%c0] : memref<1xi32, #tpu.memory_space<smem>>
    %c0_i32 = arith.constant 0 : i32
    %c0_i32_0 = arith.constant 0 : i32
    %c0_i32_1 = arith.constant 0 : i32
    return %0, %c0_i32, %c0_i32_0 : i32, i32, i32
  }
  func.func @transform_4(%arg0: i32, %arg1: memref<1xi32, #tpu.memory_space<smem>>) -> (i32, i32, i32) {
    %c0_i32 = arith.constant 0 : i32
    %c0_i32_0 = arith.constant 0 : i32
    %c0_i32_1 = arith.constant 0 : i32
    return %arg0, %c0_i32, %c0_i32_0 : i32, i32, i32
  }
}

</mosaic_0001>

<bundles_post_ra>
// kernel: tpu_custom_call.1
= control target key start
LH: loop header
LB: loop body
LE: loop exit
PB: predicated region body
PF: predicated region fallthrough
CT: control target
= control target key end

     0   :  { %s1329_s0 = inlined_call_operand.<no memory space> [shape: s32[1], index: 0, kind: input, shape index: {}]   ;;  %s1330_s1 = inlined_call_operand.hbm [shape: f32[2,16,256], index: 1, kind: input, shape index: {}]   ;;  %s1331_s2 = inlined_call_operand.vmem [shape: bf16[3,8,48], index: 2, kind: input, shape index: {}]   ;;  %s1332_s3 = inlined_call_operand.vmem [shape: f32[2,8,1], index: 3, kind: input, shape index: {}]   ;;  %s1333_s4 = inlined_call_operand.vmem [shape: f32[2,8,1], index: 4, kind: input, shape index: {}]   ;;  %s1334_s5 = inlined_call_operand.hbm [shape: f32[2,8,256], index: 5, kind: output, shape index: {}]  }
   0x1   :  { %10 = sst [smem:[#allocation4]] %s1329_s0 }
   0x2   :  { %11 = vsyncpa [#allocation6], 0 }
   0x3   :  { %13 = vsyncpa [#allocation6 + $0x1], 0 }
   0x4   :  { %14 = vsyncpa [#allocation7], 0 }
   0x5   :  { %16 = vsyncpa [#allocation7 + $0x1], 0  ;;  %s1073_s20 = smov 0   ;;  %s1075_s21 = smov 0  }
   0x6   :  { %s1077_s22 = smov 0   ;;  %s1079_s23 = smov 0  }
   0x7 LB: > { %s1094_s0 = sadd.s32 4294967295, %s1023_s23   ;;  %s834_s24 = sadd.s32 4294967294, %s1023_s23   ;;  %s1023_s23 = sphi %s1079_s23, %s1347_s23   ;;  %s1019_s22 = sphi %s1077_s22, %s1346_s22   ;;  %s1015_s21 = sphi %s1075_s21, %s1345_s21   ;;  %s1011_s20 = sphi %s1073_s20, %s1344_s20  }
   0x8   : > { %s1098_s25 = sadd.s32 1, %s1023_s23   ;;  %s29_s26 = sadd.s32 1, %s1019_s22 }
   0x9   : > { %s26_s27 = ssub.s32 %s1023_s23, %s1098_s25  ;;  %p36_p0 = scmp.ne.s32.totalorder %s1019_s22, %s1015_s21 }
   0xa   : > { %p27_p1 = scmp.eq.s32.totalorder %s26_s27, 0  ;;  %p37_p2 = scmp.eq.s32.totalorder %s1023_s23, 0 }
   0xb   : > { %p42_p3 = scmp.ne.s32.totalorder %s1015_s21, %s1011_s20  ;;  %p43_p4 = scmp.eq.s32.totalorder %s1094_s0, 0 }
   0xc   : > { %s1110_s28 = scalar_select %p27_p1, %s1019_s22, %s29_s26  }
   0xd   : > { %p1112_p5 = por %p37_p2, %p36_p0  ;;  %p1116_p6 = por %p43_p4, %p42_p3 }
   0xe   : > { %p143_p7 = scmp.eq.s32.totalorder %s1094_s0, 1  ;;  %p149_p8 = scmp.eq.s32.totalorder %s834_s24, 1 }
   0xf   : > { %p876_p10 = scmp.lt.s32.totalorder %s1023_s23, 2  ;;  %s190_s8 = sand.u32 1, %s1019_s22  }
  0x10   : > { %p1123_p11 = por %p143_p7, %p36_p0  ;;  %p1127_p12 = por %p149_p8, %p42_p3 }
  0x11   : > { %s856_s9 = sshll.u32 %s1023_s23, 9  ;;  %s837_s10 = sshll.u32 %s190_s8, 5 }
  0x12   : > { %s1338_s6 = scalar_select %p1123_p11, 1, 0 }
  0x13   : > { %s1339_s7 = scalar_select %p1127_p12, 1, 0 }
  0x14   : > { %s1136_s13 = scalar_lea.hbm %s1330_s1, %s856_s9  ;;  %s194_s14 = scalar_lea.vmem [#allocation5], %s837_s10 }
  0x15   : > { %s201_s15 = sshll.u32 %s194_s14, 4  ;;  %p1140_p13 = pnand %p876_p10, %p1112_p5  ;;  %s1144_s15 = int_to_ptr.vmem [resolvable:$true] %s201_s15 }
  0x16   : > { %s1146_s17 = scalar_lea.sflag [#allocation6], %s190_s8  ;;  %s927_s18 = scalar_lea.hbm %s1136_s13, 512 }
  0x17   : > { %p928_p0 = scmp.ne.s32.totalorder %s1136_s13, %s927_s18  ;;  %p929_p1 = pneg %p1140_p13 }
  0x18   : > { %s932_s26 = scalar_lea.hbm %s1330_s1, 1024  ;;  %p933_p4 = scmp.lt.u32.totalorder %s1136_s13, %s1330_s1 }
  0x19   : > { %p930_p2 = pnand %p929_p1, %p928_p0  ;;  %p934_p5 = scmp.lt.u32.totalorder %s932_s26, %s927_s18 }
  0x1a   : > { %p936_p8 = scmp.lt.u32.totalorder %s927_s18, %s1136_s13 }
  0x1b   : > { %p931_p3 = pneg %p930_p2  ;;  %p935_p7 = por %p934_p5, %p933_p4 }
  0x1d   : > { %p937_p10 = por %p936_p8, %p935_p7 }
  0x1f   : > { %p938_p9 = pnand %p937_p10, %p931_p3 }
  0x21   : > { %941 = shalt.err (!%p938_p9)
}
  0x22   : > { %s942_s8 = scalar_lea.vmem %s1144_s15, 512  ;;  %s1025_s9 = smov [#allocation5]  }
  0x23   : > { %p943_p0 = scmp.ne.s32.totalorder %s1144_s15, %s942_s8  ;;  %s947_s10 = sshll.u32 %s1025_s9, 4  ;;  %s948_s10 = int_to_ptr.vmem [resolvable:$false] %s947_s10 }
  0x24   : > { %s949_s11 = scalar_lea.vmem %s948_s10, 1024  ;;  %p950_p11 = scmp.lt.s32.totalorder %s1144_s15, %s948_s10 }
  0x25   : > { %p945_p2 = pnand %p943_p0, %p929_p1  ;;  %p951_p4 = scmp.lt.s32.totalorder %s949_s11, %s942_s8 }
  0x27   : > { %p946_p12 = pneg %p945_p2  ;;  %p952_p5 = por %p951_p4, %p950_p11 }
  0x29   : > { %p953_p7 = pnand %p952_p5, %p946_p12 }
  0x2b   : > { %956 = shalt.err (!%p953_p7)
}
  0x2c   : > { %s1026_s12 = smov 256   ;;  %s1027_s14 = smov 16  }
  0x2d   : > { %871 = dma.hbm_to_vmem [thread:$0]  (!%p1140_p13), %s1136_s13, 512, %s1144_s15, %s1146_s17, %s1026_s12, %s1026_s12, %s1027_s14  }
  0x2e   : > { %p840_p9 = scmp.ge.s32.totalorder %s1023_s23, 1  ;;  %p209_p1 = scmp.lt.s32.totalorder %s1023_s23, 3 }
  0x30   : > { %p210_p3 = pnand %p840_p9, %p209_p1 }
  0x31   : > { %s1177_s18 = sand.u32 (!%p210_p3), 1, %s1015_s21  }
  0x32   : > { %213 = sbr.rel (%p210_p3) target bundleno = 1118 (0x45e), region = 36  ;;  %s841_s19 = sshll.u32 (!%p210_p3), %s1177_s18, 5 }
  0x33   : > { %s216_s24 = scalar_lea.sflag (!%p210_p3), [#allocation6], %s1177_s18  ;;  %s219_s26 = scalar_lea.vmem (!%p210_p3), [#allocation5], %s841_s19 }
  0x39   : > { %1002 = dma.done.wait (%p1116_p6), %s216_s24, 512  }
  0x3a   : > { %1004 = vsyncadd (%p1116_p6), %s216_s24, 4294966784  ;;  %v293_v0 = vlaneseq  ;;  %vm269_vm0 = vcmask 138240   ;;  %vm271_vm1 = vcmask 1047688   ;;  %v1028_v1 = vmov 0   ;;  %v273_v7 = vld [vmem:[%s219_s26] sm:$0xff]  ;;  %v275_v8 = vld [vmem:[%s219_s26 + $0x10] sm:$0xff] }
  0x3b   : > { %270 = vst.msk [vmem:[#allocation2] sm:$0xff] %vm269_vm0, %v1028_v1  ;;  %553 = vmatprep.mubr.bf16.mxu0 %v1028_v1  ;;  %509 = vmatprep.mubr.bf16.mxu1 %v1028_v1  ;;  %v274_v10 = vld [vmem:[%s219_s26 + $0x8] sm:$0xff]  ;;  %v277_v11 = vpack.c.bf16 %v275_v8, %v273_v7  ;;  %v276_v12 = vld [vmem:[%s219_s26 + $0x18] sm:$0xff]  ;;  %s1029_s30 = smov 17   ;;  %s1030_s13 = smov 18   ;;  %vm418_vm10 = vcmask 146432  }
  0x3c   : > { %272 = vst.msk [vmem:[#allocation2 + $0x10] sm:$0xff] %vm271_vm1, %v1028_v1  ;;  %v294_v2 = vand.u32 127, %v293_v0  ;;  %923 = vset.pattern.permute.xlu0 %v1028_v1  ;;  %924 = vset.pattern.permute.xlu1 %v1028_v1  ;;  %v331_v3 = vshrl.u32 %v293_v0, 7  ;;  %v278_v15 = vpack.c.bf16 %v276_v12, %v274_v10  ;;  %s1031_s15 = smov 34   ;;  %s1032_s16 = smov 2   ;;  %vm578_vm11 = vcmask 277504  }
  0x3d   : > { %281 = vrot.lane.b32.xlu0 %v277_v11, %s1029_s30  ;;  %s1033_s17 = smov 16   ;;  %s1034_s27 = smov 32  }
  0x3e   : > { %v295_v4 = vadd.s32 128, %v294_v2  ;;  %v300_v5 = vand.u32 15, %v294_v2  ;;  %v332_v9 = vsub.s32 0, %v331_v3  ;;  %v336_v13 = vsub.s32 4, %v331_v3  ;;  %s1035_s29 = smov 127   ;;  %s1036_s8 = smov 126  }
  0x3f   : > { %s1037_s9 = smov 112   ;;  %s1038_s10 = smov 96  }
  0x40   : > { %v307_v6 = vand.u32 15, %v295_v4  ;;  %vm345_vm2 = vcmp.lt.s32.totalorder %v300_v5, 15  ;;  %vm322_vm5 = vcmp.ge.s32.totalorder %v300_v5, 1  ;;  %p1341_p12 = scmp.ne.s32.totalorder %s1338_s6, 0 }
  0x41   : > { %283 = vrot.lane.b32.xlu0 %v278_v15, %s1029_s30  ;;  %s254_s30 = sld [smem:[#allocation4]] }
  0x42   : > { %vm346_vm3 = vcmp.lt.s32.totalorder %v307_v6, 15  ;;  %vm323_vm6 = vcmp.ge.s32.totalorder %v307_v6, 1 }
  0x43   : > { %vm351_vm4 = vmpackc.low %vm346_vm3, %vm345_vm2 }
  0x44   : > { %v352_v14 = vsel %vm351_vm4, 65537, %v1028_v1  ;;  %vm328_vm7 = vmpackc.low %vm323_vm6, %vm322_vm5  ;;  %vm406_vm4 = vcmask 130048  }
  0x45   : > { %v356_v16 = vrot.slane %v352_v14, %v332_v9  ;;  %v360_v17 = vrot.slane %v352_v14, %v336_v13  ;;  %v329_v18 = vsel %vm328_vm7, 65537, %v1028_v1  ;;  %vm566_vm7 = vcmask 261120  }
  0x46   : > { %v333_v19 = vrot.slane %v329_v18, %v332_v9  ;;  %v337_v20 = vrot.slane %v329_v18, %v336_v13 }
  0x47   : > { %414 = vrot.lane.b32.xlu1 %v356_v16, %s1030_s13  ;;  %574 = vrot.lane.b32.xlu0 %v356_v16, %s1031_s15  ;;  %p255_p6 = scmp.lt.s32.totalorder %s254_s30, 1 }
  0x48   : > { %vm339_vm8 = vcmp.ne.s16.totalorder %v337_v20, 0  ;;  %vm338_vm9 = vcmp.ne.s16.totalorder %v333_v19, 0 }
  0x49   : > { %s1349_s30 = smov (!%p255_p6, %s254_s30), 1 }
  0x4b   : > { %416 = vrot.lane.b32.xlu1 %v360_v17, %s1030_s13  ;;  %361 = vrot.lane.b32.xlu0 %v356_v16, %s1032_s16  ;;  %s843_s13 = sshll.u32 %s1349_s30, 3  ;;  %s1039_s30 = smov [#allocation8]  }
  0x4f   : > { %576 = vrot.lane.b32.xlu1 %v360_v17, %s1031_s15  ;;  %402 = vrot.lane.b32.xlu0 %v333_v19, %s1033_s17 }
  0x53   : > { %363 = vrot.lane.b32.xlu1 %v360_v17, %s1032_s16  ;;  %562 = vrot.lane.b32.xlu0 %v333_v19, %s1034_s27 }
  0x57   : > { %404 = vrot.lane.b32.xlu1 %v337_v20, %s1033_s17  ;;  %s264_s17 = scalar_lea.vmem %s1333_s4, %s843_s13 }
  0x5b   : > { %564 = vrot.lane.b32.xlu1 %v337_v20, %s1034_s27 }
  0xaf   : > { %v282_v21 = vpop.permute.xlu0 %281 }
  0xb0   : > { %290 = vst.msk [vmem:[#allocation2] sm:$0xff] %vm271_vm1, %v282_v21 }
  0xb3   : > { %v284_v23 = vpop.permute.xlu0 %283 }
  0xb4   : > { %v1197_v24 = vsel %vm269_vm0, %v282_v21, %v284_v23  ;;  %292 = vst.msk [vmem:[#allocation2 + $0x10] sm:$0xff] %vm269_vm0, %v284_v23  ;;  %v401_v23 = vld [vmem:[%s1331_s2] sm:$0xf] }
  0xb5   : > { %847 = vmatprep.subr.msk.bf16.mxu0 %vm339_vm8, %v1197_v24 }
  0xb7   : > { %v1201_v26 = vld [vmem:[#allocation2] sm:$0xff] }
  0xb8   : > { %376 = vrot.lane.b32.xlu0 %v1201_v26, %s1035_s29  ;;  %v340_v27 = vsel %vm338_vm9, %v1201_v26, 0 }
  0xb9   : > { %v415_v22 = vpop.permute.xlu1 %414  ;;  %522 = vmatpush1.bf16.msra.mxu0 %v340_v27  ;;  %v575_v31 = vpop.permute.xlu0 %574 }
  0xba   : > { %vm420_vm0 = vcmp.ne.s16.totalorder %v415_v22, 0  ;;  %vm580_vm1 = vcmp.ne.s16.totalorder %v575_v31, 0 }
  0xbb   : > { %v344_v30 = vld [vmem:[#allocation2 + $0x10] sm:$0xff]  ;;  %v423_v40 = vsel %vm420_vm0, %v1201_v26, 0  ;;  %v583_v41 = vsel %vm580_vm1, %v1201_v26, 0  ;;  %vm460_vm0 = vcmask 916480   ;;  %vm620_vm1 = vcmask 785408  }
  0xbc   : > { %380 = vrot.lane.b32.xlu1 %v344_v30, %s1035_s29  ;;  %378 = vrot.lane.b32.xlu0 %v1197_v24, %s1035_s29 }
  0xbd   : > { %v417_v25 = vpop.permute.xlu1 %416  ;;  %v362_v36 = vpop.permute.xlu0 %361 }
  0xbe   : > { %v419_v28 = vsel %vm418_vm10, %v415_v22, %v417_v25  ;;  %vm422_vm13 = vcmp.ne.s16.totalorder %v417_v25, 0  ;;  %vm367_vm2 = vcmp.ne.s16.totalorder %v362_v36, 0  ;;  %vm365_vm10 = vcmask 15360  }
  0xbf   : > { %vm421_vm12 = vcmp.ne.s16.totalorder %v419_v28, 0  ;;  %v425_v34 = vsel %vm422_vm13, %v344_v30, 0  ;;  %v370_v43 = vsel %vm367_vm2, %v1201_v26, 0  ;;  %vm473_vm2 = vcmask 392192  }
  0xc0   : > { %v424_v33 = vsel %vm421_vm12, %v1197_v24, 0  ;;  %433 = vrot.lane.b32.xlu0 %v425_v34, %s1036_s8 }
  0xc1   : > { %v577_v29 = vpop.permute.xlu1 %576  ;;  %431 = vrot.lane.b32.xlu1 %v424_v33, %s1036_s8  ;;  %v403_v42 = vpop.permute.xlu0 %402 }
  0xc2   : > { %v579_v32 = vsel %vm578_vm11, %v575_v31, %v577_v29  ;;  %vm582_vm15 = vcmp.ne.s16.totalorder %v577_v29, 0  ;;  %vm408_vm5 = vcmp.ne.s16.totalorder %v403_v42, 0 }
  0xc3   : > { %vm581_vm14 = vcmp.ne.s16.totalorder %v579_v32, 0  ;;  %v585_v38 = vsel %vm582_vm15, %v344_v30, 0  ;;  %v411_v48 = vsel %vm408_vm5, %v1201_v26, 0  ;;  %vm396_vm15 = vcmask 1031168  }
  0xc4   : > { %v584_v37 = vsel %vm581_vm14, %v1197_v24, 0  ;;  %593 = vrot.lane.b32.xlu0 %v585_v38, %s1036_s8  ;;  %vm382_vm14 = vcmask 1039360  }
  0xc5   : > { %v364_v35 = vpop.permute.xlu1 %363  ;;  %591 = vrot.lane.b32.xlu1 %v584_v37, %s1036_s8  ;;  %v563_v49 = vpop.permute.xlu0 %562 }
  0xc6   : > { %vm369_vm3 = vcmp.ne.s16.totalorder %v364_v35, 0  ;;  %vm568_vm11 = vcmp.ne.s16.totalorder %v563_v49, 0  ;;  %v366_v53 = vsel %vm365_vm10, %v362_v36, %v364_v35 }
  0xc7   : > { %v372_v44 = vsel %vm369_vm3, %v344_v30, 0  ;;  %v571_v54 = vsel %vm568_vm11, %v1201_v26, 0  ;;  %vm368_vm13 = vcmp.ne.s16.totalorder %v366_v53, 0 }
  0xc8   : > { %589 = vrot.lane.b32.xlu0 %v583_v41, %s1036_s8  ;;  %v371_v56 = vsel %vm368_vm13, %v1197_v24, 0 }
  0xc9   : > { %v405_v39 = vpop.permute.xlu1 %404  ;;  %429 = vrot.lane.b32.xlu1 %v423_v40, %s1036_s8 }
  0xca   : > { %vm410_vm6 = vcmp.ne.s16.totalorder %v405_v39, 0  ;;  %v407_v45 = vsel %vm406_vm4, %v403_v42, %v405_v39 }
  0xcb   : > { %v413_v47 = vsel %vm410_vm6, %v344_v30, 0  ;;  %vm409_vm8 = vcmp.ne.s16.totalorder %v407_v45, 0  ;;  %v845_v45 = vld [vmem:[%s1331_s2 + $0x4] sm:$0xf] }
  0xcc   : > { %394 = vrot.lane.b32.xlu0 %v372_v44, %s1036_s8  ;;  %v412_v52 = vsel %vm409_vm8, %v1197_v24, 0  ;;  %v849_v44 = vld [vmem:[%s1331_s2 + $0x8] sm:$0xf] }
  0xcd   : > { %390 = vrot.lane.b32.xlu1 %v370_v43, %s1036_s8  ;;  %v565_v46 = vpop.permute.xlu1 %564 }
  0xce   : > { %vm570_vm9 = vcmp.ne.s16.totalorder %v565_v46, 0  ;;  %v567_v50 = vsel %vm566_vm7, %v563_v49, %v565_v46 }
  0xcf   : > { %v573_v51 = vsel %vm570_vm9, %v344_v30, 0  ;;  %vm569_vm12 = vcmp.ne.s16.totalorder %v567_v50, 0 }
  0xd0   : > { %442 = vrot.lane.b32.xlu0 %v411_v48, %s1037_s9  ;;  %v572_v55 = vsel %vm569_vm12, %v1197_v24, 0 }
  0xd1   : > { %446 = vrot.lane.b32.xlu1 %v413_v47, %s1037_s9 }
  0xd4   : > { %444 = vrot.lane.b32.xlu0 %v412_v52, %s1037_s9 }
  0xd5   : > { %606 = vrot.lane.b32.xlu1 %v573_v51, %s1038_s10 }
  0xd8   : > { %604 = vrot.lane.b32.xlu0 %v572_v55, %s1038_s10 }
  0xd9   : > { %602 = vrot.lane.b32.xlu1 %v571_v54, %s1038_s10 }
  0xdd   : > { %392 = vrot.lane.b32.xlu1 %v371_v56, %s1036_s8  ;;  %s258_s8 = scalar_lea.vmem %s1332_s3, %s843_s13  ;;  %s961_s13 = sshll.u32 %s1039_s30, 4  ;;  %s962_s13 = int_to_ptr.vmem [resolvable:$false] %s961_s13 }
  0xde   : > { %s963_s15 = scalar_lea.vmem %s962_s13, 512 }
 0x12a   : > { %v377_v57 = vpop.permute.xlu0 %376 }
 0x12e   : > { %v381_v58 = vpop.permute.xlu1 %380  ;;  %v379_v59 = vpop.permute.xlu0 %378 }
 0x12f   : > { %452 = vrot.lane.b32.xlu1 %v381_v58, %s1037_s9  ;;  %v384_v60 = vsel %vm382_vm14, %v379_v59, %v381_v58  ;;  %v383_v61 = vsel %vm382_vm14, %v377_v57, %v379_v59 }
 0x130   : > { %450 = vrot.lane.b32.xlu0 %v384_v60, %s1037_s9  ;;  %523 = vmatprep.subr.bf16.mxu0 %v384_v60 }
 0x131   : > { %524 = vmatpush1.bf16.msra.mxu0 %v383_v61 }
 0x132   : > { %v434_v63 = vpop.permute.xlu0 %433 }
 0x133   : > { %v432_v62 = vpop.permute.xlu1 %431  ;;  %612 = vrot.lane.b32.xlu1 %v381_v58, %s1038_s10 }
 0x134   : > { %610 = vrot.lane.b32.xlu0 %v384_v60, %s1038_s10  ;;  %v436_v5 = vsel %vm396_vm15, %v432_v62, %v434_v63 }
 0x136   : > { %v594_v2 = vpop.permute.xlu0 %593 }
 0x137   : > { %v592_v0 = vpop.permute.xlu1 %591  ;;  %458 = vrot.lane.b32.xlu1 %v434_v63, %s1037_s9 }
 0x138   : > { %448 = vrot.lane.b32.xlu0 %v383_v61, %s1037_s9  ;;  %v596_v8 = vsel %vm396_vm15, %v592_v0, %v594_v2 }
 0x13a   : > { %v590_v4 = vpop.permute.xlu0 %589 }
 0x13b   : > { %v430_v3 = vpop.permute.xlu1 %429  ;;  %618 = vrot.lane.b32.xlu1 %v594_v2, %s1038_s10  ;;  %v595_v11 = vsel %vm396_vm15, %v590_v4, %v592_v0  ;;  %v703_v0 = vld [vmem:[%s264_s17] sm:$0xff] }
 0x13c   : > { %456 = vrot.lane.b32.xlu0 %v436_v5, %s1037_s9  ;;  %v435_v12 = vsel %vm396_vm15, %v430_v3, %v432_v62  ;;  %v692_v5 = vld [vmem:[%s258_s8] sm:$0xff] }
 0x13e   : > { %v395_v7 = vpop.permute.xlu0 %394 }
 0x13f   : > { %v391_v6 = vpop.permute.xlu1 %390  ;;  %608 = vrot.lane.b32.xlu1 %v383_v61, %s1038_s10 }
 0x140   : > { %616 = vrot.lane.b32.xlu0 %v596_v8, %s1038_s10 }
 0x142   : > { %v443_v10 = vpop.permute.xlu0 %442 }
 0x143   : > { %v447_v9 = vpop.permute.xlu1 %446  ;;  %614 = vrot.lane.b32.xlu1 %v595_v11, %s1038_s10  ;;  %s857_s10 = sshll.u32 %s1094_s0, 8  ;;  %s720_s0 = scalar_lea.sflag [#allocation7], %s1177_s18 }
 0x144   : > { %454 = vrot.lane.b32.xlu0 %v435_v12, %s1037_s9  ;;  %s842_s9 = sshll.u32 %s1177_s18, 4  ;;  %s1285_s24 = scalar_lea.hbm %s1334_s5, %s857_s10 }
 0x145   : > { %s253_s11 = scalar_lea.vmem [#allocation8], %s842_s9 }
 0x146   : > { %v445_v14 = vpop.permute.xlu0 %444  ;;  %s734_s12 = sshll.u32 %s253_s11, 4  ;;  %s1287_s12 = int_to_ptr.vmem [resolvable:$true] %s734_s12 }
 0x147   : > { %v607_v13 = vpop.permute.xlu1 %606  ;;  %v462_v15 = vsel %vm460_vm0, %v445_v14, %v447_v9  ;;  %v461_v16 = vsel %vm460_vm0, %v443_v10, %v445_v14  ;;  %s957_s26 = scalar_lea.vmem %s1287_s12, 256  ;;  %p964_p10 = scmp.lt.s32.totalorder %s1287_s12, %s962_s13 }
 0x148   : > { %477 = vmatprep.subr.bf16.mxu1 %v462_v15  ;;  %p958_p11 = scmp.ne.s32.totalorder %s1287_s12, %s957_s26  ;;  %p965_p0 = scmp.lt.s32.totalorder %s963_s15, %s957_s26 }
 0x149   : > { %478 = vmatpush1.bf16.msra.mxu1 %v461_v16 }
 0x14a   : > { %v605_v18 = vpop.permute.xlu0 %604  ;;  %p959_p13 = pnand %p958_p11, %p1341_p12  ;;  %p966_p2 = por %p965_p0, %p964_p10 }
 0x14b   : > { %v603_v17 = vpop.permute.xlu1 %602  ;;  %v622_v22 = vsel %vm620_vm1, %v605_v18, %v607_v13 }
 0x14c   : > { %v621_v24 = vsel %vm620_vm1, %v603_v17, %v605_v18  ;;  %p960_p8 = pneg %p959_p13 }
 0x14e   : > { %p967_p4 = pnand %p966_p2, %p960_p8 }
 0x14f   : > { %v393_v19 = vpop.permute.xlu1 %392 }
 0x150   : > { %v398_v20 = vsel %vm396_vm15, %v393_v19, %v395_v7  ;;  %v397_v21 = vsel %vm396_vm15, %v391_v6, %v393_v19 }
 0x151   : > { %525 = vmatprep.subr.bf16.mxu0 %v398_v20 }
 0x152   : > { %526 = vmatpush1.bf16.msra.mxu0 %v397_v21 }
 0x153   : > { %636 = vmatprep.subr.bf16.mxu0 %v622_v22 }
 0x155   : > { %848 = vmatmul.mubr.msk.bf16.vlgmr.msra.gmra.mrb[0].mxu0 %vm473_vm2, %v401_v23 }
 0x156   : > { %637 = vmatpush1.bf16.msra.mxu0 %v621_v24  ;;  %668 = vmatprep.mubr.bf16.mxu0 %v1028_v1 }
 0x1a1   : > { %v453_v25 = vpop.permute.xlu1 %452 }
 0x1a2   : > { %v451_v26 = vpop.permute.xlu0 %450 }
 0x1a3   : > { %v464_v27 = vsel %vm460_vm0, %v451_v26, %v453_v25 }
 0x1a4   : > { %479 = vmatprep.subr.bf16.mxu1 %v464_v27 }
 0x1a5   : > { %v613_v28 = vpop.permute.xlu1 %612 }
 0x1a6   : > { %v611_v29 = vpop.permute.xlu0 %610 }
 0x1a7   : > { %v624_v30 = vsel %vm620_vm1, %v611_v29, %v613_v28 }
 0x1a8   : > { %638 = vmatprep.subr.bf16.mxu0 %v624_v30 }
 0x1a9   : > { %v459_v31 = vpop.permute.xlu1 %458 }
 0x1aa   : > { %v449_v32 = vpop.permute.xlu0 %448 }
 0x1ab   : > { %v463_v33 = vsel %vm460_vm0, %v449_v32, %v451_v26 }
 0x1ac   : > { %480 = vmatpush1.bf16.msra.mxu1 %v463_v33 }
 0x1ad   : > { %v619_v34 = vpop.permute.xlu1 %618 }
 0x1ae   : > { %v457_v35 = vpop.permute.xlu0 %456 }
 0x1af   : > { %v466_v36 = vsel %vm460_vm0, %v457_v35, %v459_v31 }
 0x1b0   : > { %481 = vmatprep.subr.bf16.mxu1 %v466_v36 }
 0x1b1   : > { %v609_v1 = vpop.permute.xlu1 %608 }
 0x1b2   : > { %v623_v37 = vsel %vm620_vm1, %v609_v1, %v611_v29  ;;  %v617_v38 = vpop.permute.xlu0 %616 }
 0x1b3   : > { %639 = vmatpush1.bf16.msra.mxu0 %v623_v37  ;;  %v626_v39 = vsel %vm620_vm1, %v617_v38, %v619_v34 }
 0x1b4   : > { %640 = vmatprep.subr.bf16.mxu0 %v626_v39 }
 0x1b5   : > { %v615_v40 = vpop.permute.xlu1 %614 }
 0x1b6   : > { %v625_v41 = vsel %vm620_vm1, %v615_v40, %v617_v38  ;;  %v455_v42 = vpop.permute.xlu0 %454 }
 0x1b7   : > { %641 = vmatpush1.bf16.msra.mxu0 %v625_v41  ;;  %v465_v43 = vsel %vm460_vm0, %v455_v42, %v457_v35 }
 0x1b8   : > { %482 = vmatpush1.bf16.msra.mxu1 %v465_v43 }
 0x1ba   : > { %850 = vmatmul.mubr.msk.bf16.vlgmr.msra.gmra.mrb[0].mxu0 %vm473_vm2, %v849_v44 }
 0x1bb   : > { %846 = vmatmul.mubr.msk.bf16.vlgmr.msra.gmra.mrb[0].mxu1 %vm473_vm2, %v845_v45 }
 0x28d   : > { %v670_v46 = vpop.f32.mrb[0].mxu0 }
 0x28e   : > { %v672_v47 = vpop.f32.mrb[1].mxu0  ;;  %v511_v48 = vpop.f32.mrb[0].mxu1 }
 0x28f   : > { %v858_v49 = vadd.f32 %v670_v46, %v511_v48  ;;  %v674_v50 = vpop.f32.mrb[2].mxu0  ;;  %v513_v51 = vpop.f32.mrb[1].mxu1 }
 0x290   : > { %v859_v52 = vadd.f32 %v672_v47, %v513_v51  ;;  %v675_v53 = vpop.f32.mrb[3].mxu0  ;;  %v515_v54 = vpop.f32.mrb[2].mxu1 }
 0x291   : > { %v516_v55 = vpop.f32.mrb[3].mxu1 }
 0x292   : > { %v679_v56 = vadd.f32 %v859_v52, %v858_v49 }
 0x294   : > { %680 = vadd.xlane.f32.xlu0 %v679_v56 }
 0x321   : > { %v681_v57 = vpop.xlane.xlu0 %680 }
 0x322   : > { %v683_v58 = vmul.f32 0.00390625, %v681_v57 }
 0x324   : > { %v684_v59 = vsub.f32 %v858_v49, %v683_v58  ;;  %v685_v60 = vsub.f32 %v859_v52, %v683_v58 }
 0x326   : > { %v686_v61 = vmul.f32 %v684_v59, %v684_v59  ;;  %v687_v62 = vmul.f32 %v685_v60, %v685_v60 }
 0x328   : > { %v688_v63 = vadd.f32 %v687_v62, %v686_v61 }
 0x32a   : > { %689 = vadd.xlane.f32.xlu1 %v688_v63 }
 0x33b   : > { %706 = vperm.xlu1 %924, %v703_v0  }
 0x3b7   : > { %v690_v2 = vpop.xlane.xlu1 %689 }
 0x3b8   : > { %v691_v3 = vmul.f32 0.00390625, %v690_v2 }
 0x3ba   : > { %v693_v4 = vadd.f32 1e-05, %v691_v3 }
 0x3bb   : > { %v707_v9 = vpop.permute.xlu1 %706 }
 0x3bc   : > { %925 = vrsqrt.f32 %v693_v4 }
 0x3c6   : > { %v926_v6 = vpop.eup %925 }
 0x3c7   : > { %v695_v7 = vmul.f32 %v926_v6, %v692_v5 }
 0x3c9   : > { %698 = vperm.xlu0 %923, %v695_v7  }
 0x448   : > { %v699_v8 = vpop.permute.xlu0 %698 }
 0x449   : > { %v701_v10 = vmul.f32 %v699_v8, %v684_v59  ;;  %v702_v11 = vmul.f32 %v699_v8, %v685_v60 }
 0x44b   : > { %v709_v12 = vadd.f32 %v707_v9, %v701_v10  ;;  %v710_v13 = vadd.f32 %v707_v9, %v702_v11 }
 0x44d   : > { %vm711_vm3 = vcmp.ge.f32.partialorder %v709_v12, 0.0  ;;  %vm712_vm4 = vcmp.ge.f32.partialorder %v710_v13, 0.0  ;;  %v713_v14 = vmul.f32 0.01, %v709_v12  ;;  %v714_v15 = vmul.f32 0.01, %v710_v13 }
 0x44f   : > { %v715_v16 = vsel %vm711_vm3, %v709_v12, %v713_v14  ;;  %v716_v17 = vsel %vm712_vm4, %v710_v13, %v714_v15 }
 0x450   : > { %717 = vst [vmem:[%s253_s11] sm:$0xff] %v715_v16  ;;  %718 = vst [vmem:[%s253_s11 + $0x8] sm:$0xff] %v716_v17 }
 0x451   : > { %970 = shalt.err (!%p967_p4)
}
 0x452   : > { %s971_s18 = scalar_lea.hbm %s1285_s24, 256  ;;  %s975_s27 = scalar_lea.hbm %s1334_s5, 512 }
 0x453   : > { %p972_p5 = scmp.ne.s32.totalorder %s1285_s24, %s971_s18  ;;  %p976_p1 = scmp.lt.u32.totalorder %s1285_s24, %s1334_s5 }
 0x454   : > { %p977_p3 = scmp.lt.u32.totalorder %s975_s27, %s971_s18  ;;  %p979_p11 = scmp.lt.u32.totalorder %s971_s18, %s1285_s24 }
 0x455   : > { %p973_p7 = pnand %p972_p5, %p1341_p12 }
 0x456   : > { %p978_p6 = por %p977_p3, %p976_p1 }
 0x457   : > { %p974_p9 = pneg %p973_p7 }
 0x458   : > { %p980_p13 = por %p979_p11, %p978_p6 }
 0x45a   : > { %p981_p8 = pnand %p980_p13, %p974_p9 }
 0x45c   : > { %984 = shalt.err (!%p981_p8)
}
 0x45d   : > { %866 = dma.vmem_to_hbm [thread:$0]  (%p1341_p12), %s1287_s12, 256, %s1285_s24, %s720_s0  }
 0x45e PF: > { %s746_s9 = sand.u32 1, %s1011_s20   ;;  %p1342_p10 = scmp.ne.s32.totalorder %s1339_s7, 0 }
 0x45f   : > { %p1343_p0 = scmp.ge.s32.totalorder %s1023_s23, 2  ;;  %s747_s10 = scalar_lea.sflag [#allocation7], %s746_s9 }
 0x461   : > { %p873_p2 = pnand %p1343_p0, %p1342_p10 }
 0x463   : > { %1006 = dma.done.wait (!%p873_p2), %s747_s10, 256  }
 0x464   : > { %1008 = vsyncadd (!%p873_p2), %s747_s10, 4294967040  ;;  %p19_p4 = scmp.ge.s32.totalorder %s1098_s25, 4   ;;  %s1344_s20 = smov %s1015_s21 }
 0x465   : > { %s1345_s21 = smov %s1019_s22  ;;  %s1346_s22 = smov %s1110_s28 }
 0x466   : > { %s1347_s23 = smov %s1098_s25  ;;  %21 = sbr.rel (!%p19_p4) target bundleno = 7 (0x7), region = 89 }
 0x46d   :  { %752 = vsyncpa [#allocation6], 1 }
 0x46e   :  { %754 = vsyncpa [#allocation6 + $0x1], 1 }
 0x46f   :  { %755 = vsyncpa [#allocation7], 1 }
 0x470   :  { %757 = vsyncpa [#allocation7 + $0x1], 1 }

</bundles_post_ra>
